<compile_context>
chip_gen: v7x
topology: tpu7x:2x2x1
jax: 0.10.0
libtpu: 0.0.40
codegen_flags: <defaults>
</compile_context>

<pallas_src>
import functools

import jax
import jax.numpy as jnp
from jax import lax
from jax.experimental import pallas as pl
from jax.experimental.pallas import tpu as pltpu

IN_DIM = 768
HID_DIM = 200
OUT_DIM = 1
BN_EPS = 1e-5


def _round_up(x, m):
    return ((x + m - 1) // m) * m


def fc_classifier_kernel(z_ref, w1_ref, p_ref, o_ref):
    # ---- Linear(768 -> 200), eval-mode BatchNorm pre-folded into W1'/b1' (MXU) ----
    h = jnp.dot(z_ref[...], w1_ref[...], preferred_element_type=jnp.float32)
    h = h + p_ref[0:1, :]                      # folded bias b1' (sublane broadcast, VPU)

    # ---- Dropout(0.1): identity in eval mode ----
    # TODO(synk): training-mode dropout (stochastic mask via pltpu.prng_*) intentionally omitted.

    # ---- ReLU (VPU) ----
    h = jnp.maximum(h, 0.0)

    # ---- Linear(200 -> 1) as VPU multiply + XLU lane reduce (avoids 1-column MXU matmul) ----
    w2_row = p_ref[1:2, :]                     # (1, HID_DIM)
    b2 = p_ref[2:3, 0:1]                       # (1, 1)
    o_ref[...] = jnp.sum(h * w2_row, axis=-1, keepdims=True) + b2


def fold_params(params):
    """Fold eval-mode BatchNorm into the first Linear; pack the small vectors into one array."""
    w1, b1, gamma, beta, mean, var, w2, b2 = params
    scale = gamma * lax.rsqrt(var + BN_EPS)                       # (1, HID_DIM)
    w1_f = (w1 * scale).astype(jnp.float32)                       # (IN_DIM, HID_DIM)
    b1_f = ((b1 - mean) * scale + beta).astype(jnp.float32)       # (1, HID_DIM)
    w2_row = w2.reshape(1, HID_DIM).astype(jnp.float32)           # (1, HID_DIM)
    b2_row = jnp.full((1, HID_DIM), b2.reshape(()), jnp.float32)  # (1, HID_DIM)
    packed = jnp.concatenate([b1_f, w2_row, b2_row], axis=0)      # (3, HID_DIM)
    return w1_f, packed


@functools.partial(jax.jit, static_argnames=("batch_tile",))
def fc_classifier(z, w1_folded, packed, *, batch_tile=1024):
    """z: [N, 768] float32 -> [N, 1] float32 (eval-mode forward of fc_Classifier)."""
    n = z.shape[0]
    # Clamp the tile for small batches; keep it a multiple of 8 sublanes.
    tile = min(batch_tile, _round_up(n, 8))
    grid = (pl.cdiv(n, tile),)

    cost = pl.CostEstimate(
        flops=2 * n * IN_DIM * HID_DIM + 3 * n * HID_DIM,
        transcendentals=0,
        bytes_accessed=(n * IN_DIM + IN_DIM * HID_DIM + 3 * HID_DIM + n * OUT_DIM) * 4,
    )

    return pl.pallas_call(
        fc_classifier_kernel,
        out_shape=jax.ShapeDtypeStruct((n, OUT_DIM), jnp.float32),
        grid_spec=pltpu.PrefetchScalarGridSpec(
            num_scalar_prefetch=0,
            grid=grid,
            in_specs=[
                pl.BlockSpec((tile, IN_DIM), lambda i: (i, 0)),      # z (batch-tiled)
                pl.BlockSpec((IN_DIM, HID_DIM), lambda i: (0, 0)),   # folded W1 (fetched once)
                pl.BlockSpec((3, HID_DIM), lambda i: (0, 0)),        # packed [b1'; w2_row; b2]
            ],
            out_specs=pl.BlockSpec((tile, OUT_DIM), lambda i: (i, 0)),
        ),
        compiler_params=pltpu.CompilerParams(
            dimension_semantics=("parallel",)),
        cost_estimate=cost,
    )(z, w1_folded, packed)


def init_params(key):
    """Deterministic synthetic parameters matching the PyTorch module shapes."""
    k1, k2, k3, k4, k5, k6 = jax.random.split(key, 6)
    # nn.Linear(768, 200): weight [200, 768] -> stored transposed [768, 200]
    bound1 = 1.0 / jnp.sqrt(IN_DIM)
    w1 = jax.random.uniform(k1, (IN_DIM, HID_DIM), jnp.float32, -bound1, bound1)
    b1 = jax.random.uniform(k2, (1, HID_DIM), jnp.float32, -bound1, bound1)
    # BatchNorm1d(200) affine params + running stats
    gamma = jnp.ones((1, HID_DIM), jnp.float32)
    beta = jnp.zeros((1, HID_DIM), jnp.float32)
    mean = 0.1 * jax.random.normal(k3, (1, HID_DIM), jnp.float32)
    var = jnp.abs(jax.random.normal(k4, (1, HID_DIM), jnp.float32)) + 0.5
    # nn.Linear(200, 1): weight [1, 200] -> stored transposed [200, 1]
    bound2 = 1.0 / jnp.sqrt(HID_DIM)
    w2 = jax.random.uniform(k5, (HID_DIM, OUT_DIM), jnp.float32, -bound2, bound2)
    b2 = jax.random.uniform(k6, (1, OUT_DIM), jnp.float32, -bound2, bound2)
    return (w1, b1, gamma, beta, mean, var, w2, b2)


def reference(z, params):
    """Pure-JAX reference using the *unfolded* params (mirrors PyTorch eval forward)."""
    w1, b1, gamma, beta, mean, var, w2, b2 = params
    h = z @ w1 + b1
    h = (h - mean) * lax.rsqrt(var + BN_EPS) * gamma + beta
    h = jnp.maximum(h, 0.0)
    return h @ w2 + b2


if __name__ == "__main__":
    key = jax.random.PRNGKey(0)
    kp, kz = jax.random.split(key)
    params = init_params(kp)
    w1_folded, packed = fold_params(params)

    N = 16  # small batch consistent with Linear(768, ...) input
    z = jax.random.normal(kz, (N, IN_DIM), jnp.float32)

    out = fc_classifier(z, w1_folded, packed)
    out = jax.block_until_ready(out)

    ref = reference(z, params)
    assert out.shape == (N, OUT_DIM)
    assert jnp.allclose(out, ref, atol=1e-4, rtol=1e-4), float(jnp.max(jnp.abs(out - ref)))
    print("KERNEL_OK")
</pallas_src>

<mosaic_0001>
module attributes {stable_mosaic.version = 11 : i64} {
  func.func @fc_classifier_kernel(%arg0: i32, %arg1: memref<16x768xf32, #tpu.memory_space<vmem>>, %arg2: memref<768x200xf32, #tpu.memory_space<vmem>>, %arg3: memref<3x200xf32, #tpu.memory_space<vmem>>, %arg4: memref<16x1xf32, #tpu.memory_space<vmem>>) attributes {dimension_semantics = [#tpu.dimension_semantics<parallel>], iteration_bounds = array<i64: 1>, scalar_prefetch = 0 : i64, scratch_operands = 0 : i64, tpu.core_type = #tpu.core_type<tc>, window_params = [{transform_indices = @transform_0, window_bounds = array<i64: 16, 768>}, {pipeline_mode = #tpu.pipeline_mode<synchronous>, transform_indices = @transform_1, window_bounds = array<i64: 768, 200>}, {pipeline_mode = #tpu.pipeline_mode<synchronous>, transform_indices = @transform_2, window_bounds = array<i64: 3, 200>}, {transform_indices = @transform_3, window_bounds = array<i64: 16, 1>}]} {
    %c0 = arith.constant 0 : index
    %c0_0 = arith.constant 0 : index
    %0 = vector.load %arg1[%c0, %c0_0] : memref<16x768xf32, #tpu.memory_space<vmem>>, vector<16x768xf32>
    %c0_1 = arith.constant 0 : index
    %c0_2 = arith.constant 0 : index
    %1 = vector.load %arg2[%c0_1, %c0_2] : memref<768x200xf32, #tpu.memory_space<vmem>>, vector<768x200xf32>
    %cst = arith.constant dense<0.000000e+00> : vector<16x200xf32>
    %2 = tpu.matmul %0, %1, %cst {dimension_numbers = #tpu.dot_dimension_numbers<[1], [0], [0], [1], [0, 0, 1, 1], [], []>} : vector<16x768xf32>, vector<768x200xf32>, vector<16x200xf32> -> vector<16x200xf32>
    %c0_3 = arith.constant 0 : index
    %c0_4 = arith.constant 0 : index
    %3 = vector.load %arg3[%c0_3, %c0_4] : memref<3x200xf32, #tpu.memory_space<vmem>>, vector<1x200xf32>
    %4 = vector.broadcast %3 : vector<1x200xf32> to vector<16x200xf32>
    %5 = arith.addf %2, %4 : vector<16x200xf32>
    %cst_5 = arith.constant 0.000000e+00 : f32
    %6 = vector.broadcast %cst_5 : f32 to vector<16x200xf32>
    %7 = arith.maximumf %5, %6 : vector<16x200xf32>
    %c1 = arith.constant 1 : index
    %c0_6 = arith.constant 0 : index
    %8 = vector.load %arg3[%c1, %c0_6] : memref<3x200xf32, #tpu.memory_space<vmem>>, vector<1x200xf32>
    %c2 = arith.constant 2 : index
    %c0_7 = arith.constant 0 : index
    %9 = vector.load %arg3[%c2, %c0_7] : memref<3x200xf32, #tpu.memory_space<vmem>>, vector<1x1xf32>
    %10 = vector.broadcast %8 : vector<1x200xf32> to vector<16x200xf32>
    %11 = arith.mulf %7, %10 : vector<16x200xf32>
    %cst_8 = arith.constant dense<0.000000e+00> : vector<16xf32>
    %12 = vector.multi_reduction <add>, %11, %cst_8 [1] : vector<16x200xf32> to vector<16xf32>
    %13 = vector.shape_cast %12 : vector<16xf32> to vector<16x1xf32>
    %14 = vector.broadcast %9 : vector<1x1xf32> to vector<16x1xf32>
    %15 = arith.addf %13, %14 : vector<16x1xf32>
    %c0_9 = arith.constant 0 : index
    %c0_10 = arith.constant 0 : index
    %16 = vector.load %arg4[%c0_9, %c0_10] : memref<16x1xf32, #tpu.memory_space<vmem>>, vector<16x1xf32>
    tpu.vector_store %arg4[%c0_9, %c0_10], %15 {strides = array<i32>} : memref<16x1xf32, #tpu.memory_space<vmem>>, vector<16x1xf32>,
    return
  }
  func.func @transform_0(%arg0: i32) -> (i32, i32) {
    %c0_i32 = arith.constant 0 : i32
    %c0_i32_0 = arith.constant 0 : i32
    return %arg0, %c0_i32 : i32, i32
  }
  func.func @transform_1(%arg0: i32) -> (i32, i32) {
    %c0_i32 = arith.constant 0 : i32
    %c0_i32_0 = arith.constant 0 : i32
    %c0_i32_1 = arith.constant 0 : i32
    return %c0_i32, %c0_i32_0 : i32, i32
  }
  func.func @transform_2(%arg0: i32) -> (i32, i32) {
    %c0_i32 = arith.constant 0 : i32
    %c0_i32_0 = arith.constant 0 : i32
    %c0_i32_1 = arith.constant 0 : i32
    return %c0_i32, %c0_i32_0 : i32, i32
  }
  func.func @transform_3(%arg0: i32) -> (i32, i32) {
    %c0_i32 = arith.constant 0 : i32
    %c0_i32_0 = arith.constant 0 : i32
    return %arg0, %c0_i32 : i32, i32
  }
}

</mosaic_0001>

<bundles_post_ra>
// kernel: fc_classifier.1
= control target key start
LH: loop header
LB: loop body
LE: loop exit
PB: predicated region body
PF: predicated region fallthrough
CT: control target
= control target key end

     0   :  { %vm483_vm0 = vcmask 588800   ;;  %vm498_vm1 = vcmask 7168   ;;  %s1390_s1 = inlined_call_operand.vmem [shape: f32[768,200], index: 1, kind: input, shape index: {}]   ;;  %s1391_s0 = inlined_call_operand.vmem [shape: f32[16,768], index: 0, kind: input, shape index: {}]   ;;  %s1392_s2 = inlined_call_operand.vmem [shape: f32[3,200], index: 2, kind: input, shape index: {}]   ;;  %s1393_s3 = inlined_call_operand.vmem [shape: f32[16,1], index: 3, kind: output, shape index: {}]  }
   0x1   :  { %v27_v0 = vld [vmem:[%s1390_s1 + $0x8] sm:$0xff]  ;;  %v29_v1 = vld [vmem:[%s1390_s1 + $0x18] sm:$0xff]  ;;  %v26_v5 = vld [vmem:[%s1390_s1] sm:$0xff] }
   0x2   :  { %v91_v2 = vld [vmem:[%s1390_s1 + $0x208] sm:$0xff]  ;;  %v507_v3 = vpack.c.bf16 %v29_v1, %v27_v0  ;;  %v93_v4 = vld [vmem:[%s1390_s1 + $0x218] sm:$0xff]  ;;  %v28_v6 = vld [vmem:[%s1390_s1 + $0x10] sm:$0xff] }
   0x3   :  { %v571_v7 = vpack.c.bf16 %v93_v4, %v91_v2  ;;  %v509_v8 = vpack.c.bf16 %v28_v6, %v26_v5  ;;  %v90_v9 = vld [vmem:[%s1390_s1 + $0x200] sm:$0xff]  ;;  %v92_v10 = vld [vmem:[%s1390_s1 + $0x210] sm:$0xff]  ;;  %v31_v11 = vld [vmem:[%s1390_s1 + $0x28] sm:$0xff] }
   0x4   :  { %508 = vmatprep.subr.bf16.mxu1 %v507_v3  ;;  %v573_v12 = vpack.c.bf16 %v92_v10, %v90_v9  ;;  %v33_v13 = vld [vmem:[%s1390_s1 + $0x38] sm:$0xff]  ;;  %v95_v14 = vld [vmem:[%s1390_s1 + $0x228] sm:$0xff]  ;;  %v30_v18 = vld [vmem:[%s1390_s1 + $0x20] sm:$0xff] }
   0x5   :  { %v97_v15 = vld [vmem:[%s1390_s1 + $0x238] sm:$0xff]  ;;  %572 = vmatprep.subr.bf16.mxu0 %v571_v7  ;;  %510 = vmatpush1.bf16.msra.mxu1 %v509_v8  ;;  %v511_v16 = vpack.c.bf16 %v33_v13, %v31_v11  ;;  %v32_v19 = vld [vmem:[%s1390_s1 + $0x30] sm:$0xff]  ;;  %v94_v20 = vld [vmem:[%s1390_s1 + $0x220] sm:$0xff] }
   0x6   :  { %v575_v17 = vpack.c.bf16 %v97_v15, %v95_v14  ;;  %574 = vmatpush1.bf16.msra.mxu0 %v573_v12  ;;  %v513_v21 = vpack.c.bf16 %v32_v19, %v30_v18  ;;  %v96_v22 = vld [vmem:[%s1390_s1 + $0x230] sm:$0xff]  ;;  %v35_v23 = vld [vmem:[%s1390_s1 + $0x48] sm:$0xff]  ;;  %v37_v24 = vld [vmem:[%s1390_s1 + $0x58] sm:$0xff] }
   0x7   :  { %512 = vmatprep.subr.bf16.mxu1 %v511_v16  ;;  %v577_v25 = vpack.c.bf16 %v96_v22, %v94_v20  ;;  %v515_v26 = vpack.c.bf16 %v37_v24, %v35_v23  ;;  %v99_v27 = vld [vmem:[%s1390_s1 + $0x248] sm:$0xff]  ;;  %v101_v28 = vld [vmem:[%s1390_s1 + $0x258] sm:$0xff]  ;;  %v34_v29 = vld [vmem:[%s1390_s1 + $0x40] sm:$0xff] }
   0x8   :  { %576 = vmatprep.subr.bf16.mxu0 %v575_v17  ;;  %v579_v30 = vpack.c.bf16 %v101_v28, %v99_v27  ;;  %v36_v31 = vld [vmem:[%s1390_s1 + $0x50] sm:$0xff]  ;;  %v98_v32 = vld [vmem:[%s1390_s1 + $0x240] sm:$0xff]  ;;  %v39_v35 = vld [vmem:[%s1390_s1 + $0x68] sm:$0xff] }
   0x9   :  { %v100_v33 = vld [vmem:[%s1390_s1 + $0x250] sm:$0xff]  ;;  %514 = vmatpush1.bf16.msra.mxu1 %v513_v21  ;;  %v517_v34 = vpack.c.bf16 %v36_v31, %v34_v29  ;;  %v41_v36 = vld [vmem:[%s1390_s1 + $0x78] sm:$0xff]  ;;  %v103_v37 = vld [vmem:[%s1390_s1 + $0x268] sm:$0xff] }
   0xa   :  { %578 = vmatpush1.bf16.msra.mxu0 %v577_v25  ;;  %516 = vmatprep.subr.bf16.mxu1 %v515_v26  ;;  %v581_v38 = vpack.c.bf16 %v100_v33, %v98_v32  ;;  %v519_v39 = vpack.c.bf16 %v41_v36, %v39_v35  ;;  %v105_v40 = vld [vmem:[%s1390_s1 + $0x278] sm:$0xff]  ;;  %v38_v41 = vld [vmem:[%s1390_s1 + $0x60] sm:$0xff]  ;;  %v40_v42 = vld [vmem:[%s1390_s1 + $0x70] sm:$0xff] }
   0xb   :  { %580 = vmatprep.subr.bf16.mxu0 %v579_v30  ;;  %v583_v43 = vpack.c.bf16 %v105_v40, %v103_v37  ;;  %v102_v44 = vld [vmem:[%s1390_s1 + $0x260] sm:$0xff]  ;;  %v104_v45 = vld [vmem:[%s1390_s1 + $0x270] sm:$0xff]  ;;  %v43_v46 = vld [vmem:[%s1390_s1 + $0x88] sm:$0xff]  ;;  %v521_v50 = vpack.c.bf16 %v40_v42, %v38_v41 }
   0xc   :  { %v45_v47 = vld [vmem:[%s1390_s1 + $0x98] sm:$0xff]  ;;  %v107_v48 = vld [vmem:[%s1390_s1 + $0x288] sm:$0xff]  ;;  %v585_v51 = vpack.c.bf16 %v104_v45, %v102_v44  ;;  %v42_v53 = vld [vmem:[%s1390_s1 + $0x80] sm:$0xff] }
   0xd   :  { %v109_v49 = vld [vmem:[%s1390_s1 + $0x298] sm:$0xff]  ;;  %518 = vmatpush1.bf16.msra.mxu1 %v517_v34  ;;  %v523_v52 = vpack.c.bf16 %v45_v47, %v43_v46  ;;  %v44_v54 = vld [vmem:[%s1390_s1 + $0x90] sm:$0xff]  ;;  %v106_v55 = vld [vmem:[%s1390_s1 + $0x280] sm:$0xff] }
   0xe   :  { %582 = vmatpush1.bf16.msra.mxu0 %v581_v38  ;;  %520 = vmatprep.subr.bf16.mxu1 %v519_v39  ;;  %v587_v56 = vpack.c.bf16 %v109_v49, %v107_v48  ;;  %v108_v57 = vld [vmem:[%s1390_s1 + $0x290] sm:$0xff]  ;;  %v47_v58 = vld [vmem:[%s1390_s1 + $0xa8] sm:$0xff]  ;;  %v49_v59 = vld [vmem:[%s1390_s1 + $0xb8] sm:$0xff]  ;;  %v525_v62 = vpack.c.bf16 %v44_v54, %v42_v53 }
   0xf   :  { %584 = vmatprep.subr.bf16.mxu0 %v583_v43  ;;  %v111_v60 = vld [vmem:[%s1390_s1 + $0x2a8] sm:$0xff]  ;;  %v113_v61 = vld [vmem:[%s1390_s1 + $0x2b8] sm:$0xff]  ;;  %v589_v63 = vpack.c.bf16 %v108_v57, %v106_v55  ;;  %v527_v0 = vpack.c.bf16 %v49_v59, %v47_v58  ;;  %v46_v1 = vld [vmem:[%s1390_s1 + $0xa0] sm:$0xff] }
  0x10   :  { %v48_v2 = vld [vmem:[%s1390_s1 + $0xb0] sm:$0xff]  ;;  %v110_v3 = vld [vmem:[%s1390_s1 + $0x2a0] sm:$0xff]  ;;  %v591_v4 = vpack.c.bf16 %v113_v61, %v111_v60  ;;  %v51_v6 = vld [vmem:[%s1390_s1 + $0xc8] sm:$0xff] }
  0x11   :  { %522 = vmatpush1.bf16.msra.mxu1 %v521_v50  ;;  %v112_v5 = vld [vmem:[%s1390_s1 + $0x2b0] sm:$0xff]  ;;  %v53_v7 = vld [vmem:[%s1390_s1 + $0xd8] sm:$0xff]  ;;  %v115_v8 = vld [vmem:[%s1390_s1 + $0x2c8] sm:$0xff]  ;;  %v529_v10 = vpack.c.bf16 %v48_v2, %v46_v1 }
  0x12   :  { %586 = vmatpush1.bf16.msra.mxu0 %v585_v51  ;;  %524 = vmatprep.subr.bf16.mxu1 %v523_v52  ;;  %v117_v9 = vld [vmem:[%s1390_s1 + $0x2d8] sm:$0xff]  ;;  %v593_v11 = vpack.c.bf16 %v112_v5, %v110_v3  ;;  %v531_v12 = vpack.c.bf16 %v53_v7, %v51_v6  ;;  %v50_v13 = vld [vmem:[%s1390_s1 + $0xc0] sm:$0xff]  ;;  %v52_v14 = vld [vmem:[%s1390_s1 + $0xd0] sm:$0xff] }
  0x13   :  { %588 = vmatprep.subr.bf16.mxu0 %v587_v56  ;;  %v114_v15 = vld [vmem:[%s1390_s1 + $0x2c0] sm:$0xff]  ;;  %v595_v16 = vpack.c.bf16 %v117_v9, %v115_v8  ;;  %v116_v17 = vld [vmem:[%s1390_s1 + $0x2d0] sm:$0xff]  ;;  %v55_v18 = vld [vmem:[%s1390_s1 + $0xe8] sm:$0xff]  ;;  %v533_v22 = vpack.c.bf16 %v52_v14, %v50_v13 }
  0x14   :  { %v57_v19 = vld [vmem:[%s1390_s1 + $0xf8] sm:$0xff]  ;;  %v119_v20 = vld [vmem:[%s1390_s1 + $0x2e8] sm:$0xff]  ;;  %v597_v23 = vpack.c.bf16 %v116_v17, %v114_v15  ;;  %v54_v25 = vld [vmem:[%s1390_s1 + $0xe0] sm:$0xff] }
  0x15   :  { %526 = vmatpush1.bf16.msra.mxu1 %v525_v62  ;;  %v121_v21 = vld [vmem:[%s1390_s1 + $0x2f8] sm:$0xff]  ;;  %v535_v24 = vpack.c.bf16 %v57_v19, %v55_v18  ;;  %v56_v26 = vld [vmem:[%s1390_s1 + $0xf0] sm:$0xff]  ;;  %v118_v27 = vld [vmem:[%s1390_s1 + $0x2e0] sm:$0xff] }
  0x16   :  { %590 = vmatpush1.bf16.msra.mxu0 %v589_v63  ;;  %528 = vmatprep.subr.bf16.mxu1 %v527_v0  ;;  %v599_v28 = vpack.c.bf16 %v121_v21, %v119_v20  ;;  %v120_v29 = vld [vmem:[%s1390_s1 + $0x2f0] sm:$0xff]  ;;  %v59_v30 = vld [vmem:[%s1390_s1 + $0x108] sm:$0xff]  ;;  %v61_v31 = vld [vmem:[%s1390_s1 + $0x118] sm:$0xff]  ;;  %v537_v34 = vpack.c.bf16 %v56_v26, %v54_v25 }
  0x17   :  { %592 = vmatprep.subr.bf16.mxu0 %v591_v4  ;;  %v123_v32 = vld [vmem:[%s1390_s1 + $0x308] sm:$0xff]  ;;  %v125_v33 = vld [vmem:[%s1390_s1 + $0x318] sm:$0xff]  ;;  %v601_v35 = vpack.c.bf16 %v120_v29, %v118_v27  ;;  %v539_v36 = vpack.c.bf16 %v61_v31, %v59_v30  ;;  %v58_v37 = vld [vmem:[%s1390_s1 + $0x100] sm:$0xff] }
  0x18   :  { %v60_v38 = vld [vmem:[%s1390_s1 + $0x110] sm:$0xff]  ;;  %v122_v39 = vld [vmem:[%s1390_s1 + $0x300] sm:$0xff]  ;;  %v603_v40 = vpack.c.bf16 %v125_v33, %v123_v32  ;;  %v63_v42 = vld [vmem:[%s1390_s1 + $0x128] sm:$0xff] }
  0x19   :  { %530 = vmatpush1.bf16.msra.mxu1 %v529_v10  ;;  %v124_v41 = vld [vmem:[%s1390_s1 + $0x310] sm:$0xff]  ;;  %v65_v43 = vld [vmem:[%s1390_s1 + $0x138] sm:$0xff]  ;;  %v127_v44 = vld [vmem:[%s1390_s1 + $0x328] sm:$0xff]  ;;  %v541_v46 = vpack.c.bf16 %v60_v38, %v58_v37 }
  0x1a   :  { %594 = vmatpush1.bf16.msra.mxu0 %v593_v11  ;;  %532 = vmatprep.subr.bf16.mxu1 %v531_v12  ;;  %v129_v45 = vld [vmem:[%s1390_s1 + $0x338] sm:$0xff]  ;;  %v605_v47 = vpack.c.bf16 %v124_v41, %v122_v39  ;;  %v543_v48 = vpack.c.bf16 %v65_v43, %v63_v42  ;;  %v62_v49 = vld [vmem:[%s1390_s1 + $0x120] sm:$0xff]  ;;  %v64_v50 = vld [vmem:[%s1390_s1 + $0x130] sm:$0xff] }
  0x1b   :  { %596 = vmatprep.subr.bf16.mxu0 %v595_v16  ;;  %v126_v51 = vld [vmem:[%s1390_s1 + $0x320] sm:$0xff]  ;;  %v607_v52 = vpack.c.bf16 %v129_v45, %v127_v44  ;;  %v128_v53 = vld [vmem:[%s1390_s1 + $0x330] sm:$0xff]  ;;  %v67_v54 = vld [vmem:[%s1390_s1 + $0x148] sm:$0xff]  ;;  %v545_v58 = vpack.c.bf16 %v64_v50, %v62_v49 }
  0x1c   :  { %v69_v55 = vld [vmem:[%s1390_s1 + $0x158] sm:$0xff]  ;;  %v131_v56 = vld [vmem:[%s1390_s1 + $0x348] sm:$0xff]  ;;  %v609_v59 = vpack.c.bf16 %v128_v53, %v126_v51  ;;  %v66_v61 = vld [vmem:[%s1390_s1 + $0x140] sm:$0xff] }
  0x1d   :  { %534 = vmatpush1.bf16.msra.mxu1 %v533_v22  ;;  %v133_v57 = vld [vmem:[%s1390_s1 + $0x358] sm:$0xff]  ;;  %v547_v60 = vpack.c.bf16 %v69_v55, %v67_v54  ;;  %v68_v62 = vld [vmem:[%s1390_s1 + $0x150] sm:$0xff]  ;;  %v130_v63 = vld [vmem:[%s1390_s1 + $0x340] sm:$0xff] }
  0x1e   :  { %598 = vmatpush1.bf16.msra.mxu0 %v597_v23  ;;  %536 = vmatprep.subr.bf16.mxu1 %v535_v24  ;;  %v611_v0 = vpack.c.bf16 %v133_v57, %v131_v56  ;;  %v132_v1 = vld [vmem:[%s1390_s1 + $0x350] sm:$0xff]  ;;  %v71_v2 = vld [vmem:[%s1390_s1 + $0x168] sm:$0xff]  ;;  %v73_v3 = vld [vmem:[%s1390_s1 + $0x178] sm:$0xff]  ;;  %v549_v6 = vpack.c.bf16 %v68_v62, %v66_v61 }
  0x1f   :  { %600 = vmatprep.subr.bf16.mxu0 %v599_v28  ;;  %v135_v4 = vld [vmem:[%s1390_s1 + $0x368] sm:$0xff]  ;;  %v137_v5 = vld [vmem:[%s1390_s1 + $0x378] sm:$0xff]  ;;  %v70_v7 = vld [vmem:[%s1390_s1 + $0x160] sm:$0xff]  ;;  %v613_v8 = vpack.c.bf16 %v132_v1, %v130_v63  ;;  %v551_v9 = vpack.c.bf16 %v73_v3, %v71_v2 }
  0x20   :  { %v72_v10 = vld [vmem:[%s1390_s1 + $0x170] sm:$0xff]  ;;  %v134_v11 = vld [vmem:[%s1390_s1 + $0x360] sm:$0xff]  ;;  %v615_v13 = vpack.c.bf16 %v137_v5, %v135_v4  ;;  %v75_v14 = vld [vmem:[%s1390_s1 + $0x188] sm:$0xff] }
  0x21   :  { %538 = vmatpush1.bf16.msra.mxu1 %v537_v34  ;;  %v136_v12 = vld [vmem:[%s1390_s1 + $0x370] sm:$0xff]  ;;  %v77_v15 = vld [vmem:[%s1390_s1 + $0x198] sm:$0xff]  ;;  %v15_v16 = vld [vmem:[%s1391_s0 + $0x8] sm:$0xff]  ;;  %v553_v20 = vpack.c.bf16 %v72_v10, %v70_v7 }
  0x22   :  { %602 = vmatpush1.bf16.msra.mxu0 %v601_v35  ;;  %540 = vmatprep.subr.bf16.mxu1 %v539_v36  ;;  %v139_v17 = vld [vmem:[%s1390_s1 + $0x388] sm:$0xff]  ;;  %v141_v18 = vld [vmem:[%s1390_s1 + $0x398] sm:$0xff]  ;;  %v617_v21 = vpack.c.bf16 %v136_v12, %v134_v11  ;;  %v555_v22 = vpack.c.bf16 %v77_v15, %v75_v14  ;;  %v74_v23 = vld [vmem:[%s1390_s1 + $0x180] sm:$0xff] }
  0x23   :  { %604 = vmatprep.subr.bf16.mxu0 %v603_v40  ;;  %294 = vmatprep.mubr.f32.mxu1 %v15_v16  ;;  %v17_v19 = vld [vmem:[%s1391_s0 + $0x18] sm:$0xff]  ;;  %v76_v24 = vld [vmem:[%s1390_s1 + $0x190] sm:$0xff]  ;;  %v138_v25 = vld [vmem:[%s1390_s1 + $0x380] sm:$0xff]  ;;  %v619_v26 = vpack.c.bf16 %v141_v18, %v139_v17 }
  0x24   :  { %371 = vmatprep.mubr.f32.mxu0 %v17_v19  ;;  %v140_v27 = vld [vmem:[%s1390_s1 + $0x390] sm:$0xff]  ;;  %v79_v28 = vld [vmem:[%s1390_s1 + $0x1a8] sm:$0xff]  ;;  %v81_v29 = vld [vmem:[%s1390_s1 + $0x1b8] sm:$0xff]  ;;  %v557_v32 = vpack.c.bf16 %v76_v24, %v74_v23 }
  0x25   :  { %542 = vmatpush1.bf16.msra.mxu1 %v541_v46  ;;  %v143_v30 = vld [vmem:[%s1390_s1 + $0x3a8] sm:$0xff]  ;;  %v145_v31 = vld [vmem:[%s1390_s1 + $0x3b8] sm:$0xff]  ;;  %v621_v33 = vpack.c.bf16 %v140_v27, %v138_v25  ;;  %v559_v34 = vpack.c.bf16 %v81_v29, %v79_v28  ;;  %v78_v35 = vld [vmem:[%s1390_s1 + $0x1a0] sm:$0xff] }
  0x26   :  { %606 = vmatpush1.bf16.msra.mxu0 %v605_v47  ;;  %544 = vmatprep.subr.bf16.mxu1 %v543_v48  ;;  %v80_v36 = vld [vmem:[%s1390_s1 + $0x1b0] sm:$0xff]  ;;  %v142_v37 = vld [vmem:[%s1390_s1 + $0x3a0] sm:$0xff]  ;;  %v623_v38 = vpack.c.bf16 %v145_v31, %v143_v30  ;;  %v83_v40 = vld [vmem:[%s1390_s1 + $0x1c8] sm:$0xff] }
  0x27   :  { %608 = vmatprep.subr.bf16.mxu0 %v607_v52  ;;  %v144_v39 = vld [vmem:[%s1390_s1 + $0x3b0] sm:$0xff]  ;;  %v85_v41 = vld [vmem:[%s1390_s1 + $0x1d8] sm:$0xff]  ;;  %v147_v42 = vld [vmem:[%s1390_s1 + $0x3c8] sm:$0xff]  ;;  %v561_v44 = vpack.c.bf16 %v80_v36, %v78_v35 }
  0x28   :  { %v149_v43 = vld [vmem:[%s1390_s1 + $0x3d8] sm:$0xff]  ;;  %v625_v45 = vpack.c.bf16 %v144_v39, %v142_v37  ;;  %v563_v46 = vpack.c.bf16 %v85_v41, %v83_v40  ;;  %v82_v47 = vld [vmem:[%s1390_s1 + $0x1c0] sm:$0xff]  ;;  %v84_v48 = vld [vmem:[%s1390_s1 + $0x1d0] sm:$0xff] }
  0x29   :  { %546 = vmatpush1.bf16.msra.mxu1 %v545_v58  ;;  %v146_v49 = vld [vmem:[%s1390_s1 + $0x3c0] sm:$0xff]  ;;  %v627_v50 = vpack.c.bf16 %v149_v43, %v147_v42  ;;  %v148_v51 = vld [vmem:[%s1390_s1 + $0x3d0] sm:$0xff]  ;;  %v87_v52 = vld [vmem:[%s1390_s1 + $0x1e8] sm:$0xff]  ;;  %v565_v56 = vpack.c.bf16 %v84_v48, %v82_v47 }
  0x2a   :  { %610 = vmatpush1.bf16.msra.mxu0 %v609_v59  ;;  %548 = vmatprep.subr.bf16.mxu1 %v547_v60  ;;  %v89_v53 = vld [vmem:[%s1390_s1 + $0x1f8] sm:$0xff]  ;;  %v151_v54 = vld [vmem:[%s1390_s1 + $0x3e8] sm:$0xff]  ;;  %v629_v57 = vpack.c.bf16 %v148_v51, %v146_v49  ;;  %v86_v59 = vld [vmem:[%s1390_s1 + $0x1e0] sm:$0xff] }
  0x2b   :  { %612 = vmatprep.subr.bf16.mxu0 %v611_v0  ;;  %v153_v55 = vld [vmem:[%s1390_s1 + $0x3f8] sm:$0xff]  ;;  %v567_v58 = vpack.c.bf16 %v89_v53, %v87_v52  ;;  %v88_v60 = vld [vmem:[%s1390_s1 + $0x1f0] sm:$0xff]  ;;  %v150_v61 = vld [vmem:[%s1390_s1 + $0x3e0] sm:$0xff] }
  0x2c   :  { %v631_v62 = vpack.c.bf16 %v153_v55, %v151_v54  ;;  %v152_v63 = vld [vmem:[%s1390_s1 + $0x3f0] sm:$0xff]  ;;  %v155_v0 = vld [vmem:[%s1390_s1 + $0x408] sm:$0xff]  ;;  %v157_v1 = vld [vmem:[%s1390_s1 + $0x418] sm:$0xff]  ;;  %v569_v2 = vpack.c.bf16 %v88_v60, %v86_v59 }
  0x2d   :  { %550 = vmatpush1.bf16.msra.mxu1 %v549_v6  ;;  %v633_v3 = vpack.c.bf16 %v152_v63, %v150_v61  ;;  %v635_v4 = vpack.c.bf16 %v157_v1, %v155_v0  ;;  %v154_v5 = vld [vmem:[%s1390_s1 + $0x400] sm:$0xff]  ;;  %v156_v6 = vld [vmem:[%s1390_s1 + $0x410] sm:$0xff]  ;;  %v159_v7 = vld [vmem:[%s1390_s1 + $0x428] sm:$0xff] }
  0x2e   :  { %614 = vmatpush1.bf16.msra.mxu0 %v613_v8  ;;  %552 = vmatprep.subr.bf16.mxu1 %v551_v9  ;;  %v161_v8 = vld [vmem:[%s1390_s1 + $0x438] sm:$0xff]  ;;  %v14_v9 = vld [vmem:[%s1391_s0] sm:$0xff]  ;;  %v637_v10 = vpack.c.bf16 %v156_v6, %v154_v5  ;;  %v16_v11 = vld [vmem:[%s1391_s0 + $0x10] sm:$0xff] }
  0x2f   :  { %616 = vmatprep.subr.bf16.mxu0 %v615_v13  ;;  %v639_v12 = vpack.c.bf16 %v161_v8, %v159_v7  ;;  %v158_v13 = vld [vmem:[%s1390_s1 + $0x420] sm:$0xff]  ;;  %v160_v14 = vld [vmem:[%s1390_s1 + $0x430] sm:$0xff]  ;;  %v163_v15 = vld [vmem:[%s1390_s1 + $0x448] sm:$0xff] }
  0x30   :  { %v165_v16 = vld [vmem:[%s1390_s1 + $0x458] sm:$0xff]  ;;  %v641_v18 = vpack.c.bf16 %v160_v14, %v158_v13  ;;  %v20_v19 = vld [vmem:[%s1391_s0 + $0x30] sm:$0xff]  ;;  %v22_v24 = vld [vmem:[%s1391_s0 + $0x40] sm:$0xff] }
  0x31   :  { %554 = vmatpush1.bf16.msra.mxu1 %v553_v20  ;;  %v21_v17 = vld [vmem:[%s1391_s0 + $0x38] sm:$0xff]  ;;  %v23_v20 = vld [vmem:[%s1391_s0 + $0x48] sm:$0xff]  ;;  %v164_v23 = vld [vmem:[%s1390_s1 + $0x450] sm:$0xff] }
  0x32   :  { %618 = vmatpush1.bf16.msra.mxu0 %v617_v21  ;;  %556 = vmatprep.subr.bf16.mxu1 %v555_v22  ;;  %v643_v21 = vpack.c.bf16 %v165_v16, %v163_v15  ;;  %v162_v22 = vld [vmem:[%s1390_s1 + $0x440] sm:$0xff]  ;;  %v167_v25 = vld [vmem:[%s1390_s1 + $0x468] sm:$0xff]  ;;  %v25_v29 = vld [vmem:[%s1391_s0 + $0x58] sm:$0xff] }
  0x33   :  { %620 = vmatprep.subr.bf16.mxu0 %v619_v26  ;;  %v169_v26 = vld [vmem:[%s1390_s1 + $0x478] sm:$0xff]  ;;  %v19_v27 = vld [vmem:[%s1391_s0 + $0x28] sm:$0xff]  ;;  %v645_v28 = vpack.c.bf16 %v164_v23, %v162_v22  ;;  %v166_v31 = vld [vmem:[%s1390_s1 + $0x460] sm:$0xff] }
  0x34   :  { %v647_v30 = vpack.c.bf16 %v169_v26, %v167_v25  ;;  %v170_v37 = vld [vmem:[%s1390_s1 + $0x480] sm:$0xff]  ;;  %v175_v39 = vld [vmem:[%s1390_s1 + $0x4a8] sm:$0xff]  ;;  %v177_v40 = vld [vmem:[%s1390_s1 + $0x4b8] sm:$0xff] }
  0x35   :  { %558 = vmatpush1.bf16.msra.mxu1 %v557_v32  ;;  %v168_v32 = vld [vmem:[%s1390_s1 + $0x470] sm:$0xff]  ;;  %v655_v42 = vpack.c.bf16 %v177_v40, %v175_v39  ;;  %v174_v43 = vld [vmem:[%s1390_s1 + $0x4a0] sm:$0xff]  ;;  %v183_v51 = vld [vmem:[%s1390_s1 + $0x4e8] sm:$0xff] }
  0x36   :  { %622 = vmatpush1.bf16.msra.mxu0 %v621_v33  ;;  %560 = vmatprep.subr.bf16.mxu1 %v559_v34  ;;  %v171_v33 = vld [vmem:[%s1390_s1 + $0x488] sm:$0xff]  ;;  %v173_v34 = vld [vmem:[%s1390_s1 + $0x498] sm:$0xff]  ;;  %v649_v35 = vpack.c.bf16 %v168_v32, %v166_v31  ;;  %v178_v49 = vld [vmem:[%s1390_s1 + $0x4c0] sm:$0xff] }
  0x37   :  { %624 = vmatprep.subr.bf16.mxu0 %v623_v38  ;;  %v651_v36 = vpack.c.bf16 %v173_v34, %v171_v33  ;;  %v172_v38 = vld [vmem:[%s1390_s1 + $0x490] sm:$0xff]  ;;  %v185_v52 = vld [vmem:[%s1390_s1 + $0x4f8] sm:$0xff]  ;;  %v182_v55 = vld [vmem:[%s1390_s1 + $0x4e0] sm:$0xff] }
  0x38   :  { %v653_v41 = vpack.c.bf16 %v172_v38, %v170_v37  ;;  %v663_v54 = vpack.c.bf16 %v185_v52, %v183_v51  ;;  %v186_v61 = vld [vmem:[%s1390_s1 + $0x500] sm:$0xff]  ;;  %v191_v63 = vld [vmem:[%s1390_s1 + $0x528] sm:$0xff]  ;;  %v193_v0 = vld [vmem:[%s1390_s1 + $0x538] sm:$0xff] }
  0x39   :  { %562 = vmatpush1.bf16.msra.mxu1 %v561_v44  ;;  %v176_v44 = vld [vmem:[%s1390_s1 + $0x4b0] sm:$0xff]  ;;  %v195_v5 = vld [vmem:[%s1390_s1 + $0x548] sm:$0xff]  ;;  %v197_v6 = vld [vmem:[%s1390_s1 + $0x558] sm:$0xff] }
  0x3a   :  { %626 = vmatpush1.bf16.msra.mxu0 %v625_v45  ;;  %564 = vmatprep.subr.bf16.mxu1 %v563_v46  ;;  %v179_v45 = vld [vmem:[%s1390_s1 + $0x4c8] sm:$0xff]  ;;  %v181_v46 = vld [vmem:[%s1390_s1 + $0x4d8] sm:$0xff]  ;;  %v657_v47 = vpack.c.bf16 %v176_v44, %v174_v43  ;;  %v675_v8 = vpack.c.bf16 %v197_v6, %v195_v5  ;;  %v198_v15 = vld [vmem:[%s1390_s1 + $0x560] sm:$0xff]  ;;  %v220_v44 = vlaneseq }
  0x3b   :  { %628 = vmatprep.subr.bf16.mxu0 %v627_v50  ;;  %v659_v48 = vpack.c.bf16 %v181_v46, %v179_v45  ;;  %v180_v50 = vld [vmem:[%s1390_s1 + $0x4d0] sm:$0xff]  ;;  %v207_v23 = vld [vmem:[%s1390_s1 + $0x5a8] sm:$0xff]  ;;  %v210_v33 = vld [vmem:[%s1390_s1 + $0x5c0] sm:$0xff] }
  0x3c   :  { %v661_v53 = vpack.c.bf16 %v180_v50, %v178_v49  ;;  %v200_v16 = vld [vmem:[%s1390_s1 + $0x570] sm:$0xff]  ;;  %v214_v39 = vld [vmem:[%s1390_s1 + $0x5e0] sm:$0xff]  ;;  %v221_v45 = vshrl.u32 %v220_v44, 7 }
  0x3d   :  { %566 = vmatpush1.bf16.msra.mxu1 %v565_v56  ;;  %v184_v56 = vld [vmem:[%s1390_s1 + $0x4f0] sm:$0xff]  ;;  %v18_v43 = vld [vmem:[%s1391_s0 + $0x20] sm:$0xff] }
  0x3e   :  { %630 = vmatpush1.bf16.msra.mxu0 %v629_v57  ;;  %568 = vmatprep.subr.bf16.mxu1 %v567_v58  ;;  %v187_v57 = vld [vmem:[%s1390_s1 + $0x508] sm:$0xff]  ;;  %v189_v58 = vld [vmem:[%s1390_s1 + $0x518] sm:$0xff]  ;;  %v665_v59 = vpack.c.bf16 %v184_v56, %v182_v55  ;;  %v204_v22 = vld [vmem:[%s1390_s1 + $0x590] sm:$0xff]  ;;  %v222_v46 = vsub.s32 0, %v221_v45  ;;  %v226_v49 = vsub.s32 1, %v221_v45 }
  0x3f   :  { %632 = vmatprep.subr.bf16.mxu0 %v631_v62  ;;  %v667_v60 = vpack.c.bf16 %v189_v58, %v187_v57  ;;  %v188_v62 = vld [vmem:[%s1390_s1 + $0x510] sm:$0xff] }
  0x40   :  { %v669_v1 = vpack.c.bf16 %v188_v62, %v186_v61  ;;  %v212_v34 = vld [vmem:[%s1390_s1 + $0x5d0] sm:$0xff]  ;;  %v505_v61 = vld [vmem:[%s1392_s2 + $0x1] ss:$4 sm:$0x3] }
  0x41   :  { %570 = vmatpush1.bf16.msra.mxu1 %v569_v2  ;;  %v671_v2 = vpack.c.bf16 %v193_v0, %v191_v63  ;;  %v693_v37 = vpack.c.bf16 %v212_v34, %v210_v33  ;;  %v216_v40 = vld [vmem:[%s1390_s1 + $0x5f0] sm:$0xff] }
  0x42   :  { %634 = vmatpush1.bf16.msra.mxu0 %v633_v3  ;;  %699 = vmatprep.subr.bf16.mxu1 %v635_v4  ;;  %v190_v3 = vld [vmem:[%s1390_s1 + $0x520] sm:$0xff] }
  0x43   :  { %636 = vmatprep.subr.bf16.mxu0 %v635_v4  ;;  %v192_v4 = vld [vmem:[%s1390_s1 + $0x530] sm:$0xff] }
  0x44   :  { %295 = vmatmul.mubr.f32.vlgmr.msra.gmra.mrb[0].mxu1 %v14_v9  ;;  %v673_v7 = vpack.c.bf16 %v192_v4, %v190_v3  ;;  %v194_v9 = vld [vmem:[%s1390_s1 + $0x540] sm:$0xff] }
  0x45   :  { %372 = vmatmul.mubr.f32.vlgmr.msra.gmra.mrb[0].mxu0 %v16_v11  ;;  %715 = vmatpush1.bf16.msra.mxu1 %v637_v10  ;;  %v199_v11 = vld [vmem:[%s1390_s1 + $0x568] sm:$0xff] }
  0x46   :  { %638 = vmatpush1.bf16.msra.mxu0 %v637_v10  ;;  %700 = vmatprep.subr.bf16.mxu1 %v639_v12  ;;  %v196_v10 = vld [vmem:[%s1390_s1 + $0x550] sm:$0xff] }
  0x47   :  { %640 = vmatprep.subr.bf16.mxu0 %v639_v12  ;;  %300 = vmatprep.mubr.f32.mxu1 %v21_v17  ;;  %v201_v12 = vld [vmem:[%s1390_s1 + $0x578] sm:$0xff]  ;;  %v677_v13 = vpack.c.bf16 %v196_v10, %v194_v9  ;;  %v203_v17 = vld [vmem:[%s1390_s1 + $0x588] sm:$0xff]  ;;  %v472_v9 = vrot.slane %v505_v61, %v222_v46 }
  0x48   :  { %301 = vmatmul.mubr.f32.gmra.mrb[2].mxu1 %v20_v19  ;;  %377 = vmatprep.mubr.f32.mxu0 %v23_v20  ;;  %v679_v14 = vpack.c.bf16 %v201_v12, %v199_v11  ;;  %v681_v19 = vpack.c.bf16 %v200_v16, %v198_v15 }
  0x49   :  { %716 = vmatpush1.bf16.msra.mxu1 %v641_v18  ;;  %378 = vmatmul.mubr.f32.gmra.mrb[2].mxu0 %v22_v24  ;;  %v209_v24 = vld [vmem:[%s1390_s1 + $0x5b8] sm:$0xff] }
  0x4a   :  { %642 = vmatpush1.bf16.msra.mxu0 %v641_v18  ;;  %701 = vmatprep.subr.bf16.mxu1 %v643_v21  ;;  %v205_v18 = vld [vmem:[%s1390_s1 + $0x598] sm:$0xff]  ;;  %v687_v26 = vpack.c.bf16 %v209_v24, %v207_v23 }
  0x4b   :  { %644 = vmatprep.subr.bf16.mxu0 %v643_v21  ;;  %448 = vmatprep.mubr.f32.mxu0 %v19_v27  ;;  %v683_v20 = vpack.c.bf16 %v205_v18, %v203_v17  ;;  %v202_v21 = vld [vmem:[%s1390_s1 + $0x580] sm:$0xff] }
  0x4c   :  { %454 = vmatprep.mubr.f32.mxu1 %v25_v29  ;;  %v685_v25 = vpack.c.bf16 %v204_v22, %v202_v21  ;;  %v206_v27 = vld [vmem:[%s1390_s1 + $0x5a0] sm:$0xff]  ;;  %v211_v29 = vld [vmem:[%s1390_s1 + $0x5c8] sm:$0xff] }
  0x4d   :  { %717 = vmatpush1.bf16.msra.mxu1 %v645_v28  ;;  %v506_v22 = vld [vmem:[%s1392_s2 + $0x2] ss:$0 sm:$0xff] }
  0x4e   :  { %646 = vmatpush1.bf16.msra.mxu0 %v645_v28  ;;  %702 = vmatprep.subr.bf16.mxu1 %v647_v30  ;;  %v208_v28 = vld [vmem:[%s1390_s1 + $0x5b0] sm:$0xff] }
  0x4f   :  { %648 = vmatprep.subr.bf16.mxu0 %v647_v30  ;;  %v213_v30 = vld [vmem:[%s1390_s1 + $0x5d8] sm:$0xff]  ;;  %v689_v31 = vpack.c.bf16 %v208_v28, %v206_v27 }
  0x50   :  { %v691_v32 = vpack.c.bf16 %v213_v30, %v211_v29 }
  0x51   :  { %718 = vmatpush1.bf16.msra.mxu1 %v649_v35 }
  0x52   :  { %650 = vmatpush1.bf16.msra.mxu0 %v649_v35  ;;  %703 = vmatprep.subr.bf16.mxu1 %v651_v36  ;;  %v215_v35 = vld [vmem:[%s1390_s1 + $0x5e8] sm:$0xff] }
  0x53   :  { %652 = vmatprep.subr.bf16.mxu0 %v651_v36  ;;  %v217_v36 = vld [vmem:[%s1390_s1 + $0x5f8] sm:$0xff] }
  0x54   :  { %v695_v38 = vpack.c.bf16 %v217_v36, %v215_v35 }
  0x55   :  { %719 = vmatpush1.bf16.msra.mxu1 %v653_v41 }
  0x56   :  { %654 = vmatpush1.bf16.msra.mxu0 %v653_v41  ;;  %704 = vmatprep.subr.bf16.mxu1 %v655_v42  ;;  %v697_v41 = vpack.c.bf16 %v216_v40, %v214_v39 }
  0x57   :  { %656 = vmatprep.subr.bf16.mxu0 %v655_v42  ;;  %v24_v42 = vld [vmem:[%s1391_s0 + $0x50] sm:$0xff] }
  0x59   :  { %720 = vmatpush1.bf16.msra.mxu1 %v657_v47 }
  0x5a   :  { %658 = vmatpush1.bf16.msra.mxu0 %v657_v47  ;;  %705 = vmatprep.subr.bf16.mxu1 %v659_v48  ;;  %v218_v47 = vld [vmem:[%s1392_s2] ss:$4 sm:$0x3] }
  0x5b   :  { %660 = vmatprep.subr.bf16.mxu0 %v659_v48  ;;  %v223_v51 = vrot.slane %v218_v47, %v222_v46  ;;  %v227_v52 = vrot.slane %v218_v47, %v226_v49 }
  0x5d   :  { %721 = vmatpush1.bf16.msra.mxu1 %v661_v53 }
  0x5e   :  { %662 = vmatpush1.bf16.msra.mxu0 %v661_v53  ;;  %706 = vmatprep.subr.bf16.mxu1 %v663_v54 }
  0x5f   :  { %664 = vmatprep.subr.bf16.mxu0 %v663_v54 }
  0x61   :  { %722 = vmatpush1.bf16.msra.mxu1 %v665_v59 }
  0x62   :  { %666 = vmatpush1.bf16.msra.mxu0 %v665_v59  ;;  %707 = vmatprep.subr.bf16.mxu1 %v667_v60 }
  0x63   :  { %668 = vmatprep.subr.bf16.mxu0 %v667_v60 }
  0x65   :  { %723 = vmatpush1.bf16.msra.mxu1 %v669_v1 }
  0x66   :  { %670 = vmatpush1.bf16.msra.mxu0 %v669_v1  ;;  %708 = vmatprep.subr.bf16.mxu1 %v671_v2 }
  0x67   :  { %672 = vmatprep.subr.bf16.mxu0 %v671_v2 }
  0x69   :  { %724 = vmatpush1.bf16.msra.mxu1 %v673_v7 }
  0x6a   :  { %674 = vmatpush1.bf16.msra.mxu0 %v673_v7  ;;  %709 = vmatprep.subr.bf16.mxu1 %v675_v8  ;;  %v476_v7 = vrot.slane %v505_v61, %v226_v49 }
  0x6b   :  { %676 = vmatprep.subr.bf16.mxu0 %v675_v8 }
  0x6d   :  { %725 = vmatpush1.bf16.msra.mxu1 %v677_v13 }
  0x6e   :  { %678 = vmatpush1.bf16.msra.mxu0 %v677_v13  ;;  %710 = vmatprep.subr.bf16.mxu1 %v679_v14 }
  0x6f   :  { %680 = vmatprep.subr.bf16.mxu0 %v679_v14 }
  0x71   :  { %726 = vmatpush1.bf16.msra.mxu1 %v681_v19 }
  0x72   :  { %682 = vmatpush1.bf16.msra.mxu0 %v681_v19  ;;  %711 = vmatprep.subr.bf16.mxu1 %v683_v20 }
  0x73   :  { %684 = vmatprep.subr.bf16.mxu0 %v683_v20 }
  0x75   :  { %727 = vmatpush1.bf16.msra.mxu1 %v685_v25 }
  0x76   :  { %686 = vmatpush1.bf16.msra.mxu0 %v685_v25  ;;  %712 = vmatprep.subr.bf16.mxu1 %v687_v26 }
  0x77   :  { %688 = vmatprep.subr.bf16.mxu0 %v687_v26 }
  0x79   :  { %728 = vmatpush1.bf16.msra.mxu1 %v689_v31 }
  0x7a   :  { %690 = vmatpush1.bf16.msra.mxu0 %v689_v31  ;;  %713 = vmatprep.subr.bf16.mxu1 %v691_v32 }
  0x7b   :  { %692 = vmatprep.subr.bf16.mxu0 %v691_v32 }
  0x7d   :  { %729 = vmatpush1.bf16.msra.mxu1 %v693_v37 }
  0x7e   :  { %694 = vmatpush1.bf16.msra.mxu0 %v693_v37  ;;  %714 = vmatprep.subr.bf16.mxu1 %v695_v38 }
  0x7f   :  { %696 = vmatprep.subr.bf16.mxu0 %v695_v38 }
  0x81   :  { %730 = vmatpush1.bf16.msra.mxu1 %v697_v41 }
  0x82   :  { %698 = vmatpush1.bf16.msra.mxu0 %v697_v41 }
  0x84   :  { %455 = vmatmul.mubr.f32.vlgmr.msra.gmra.mrb[4].mxu1 %v24_v42 }
  0x85   :  { %449 = vmatmul.mubr.f32.vlgmr.msra.gmra.mrb[0].mxu0 %v18_v43 }
 0x117   :  { %v296_v48 = vpop.f32.mrb[0].mxu1 }
 0x118   :  { %v298_v50 = vpop.f32.mrb[1].mxu1  ;;  %v297_v62 = vadd.f32 %v296_v48, %v223_v51 }
 0x119   :  { %v299_v0 = vadd.f32 %v298_v50, %v227_v52 }
 0x11b   :  { %v302_v53 = vpop.f32.mrb[2].mxu1 }
 0x11c   :  { %v303_v54 = vadd.f32 %v302_v53, %v223_v51  ;;  %v304_v55 = vpop.f32.mrb[3].mxu1  ;;  %v379_v56 = vpop.f32.mrb[2].mxu0 }
 0x11d   :  { %v305_v57 = vadd.f32 %v304_v55, %v227_v52  ;;  %v381_v58 = vpop.f32.mrb[3].mxu0 }
 0x11e   :  { %v380_v59 = vadd.f32 %v379_v56, %v303_v54 }
 0x11f   :  { %v382_v60 = vadd.f32 %v381_v58, %v305_v57 }
 0x157   :  { %v456_v63 = vpop.f32.mrb[4].mxu1 }
 0x158   :  { %v450_v1 = vpop.f32.mrb[0].mxu0  ;;  %v457_v2 = vadd.f32 %v456_v63, %v380_v59  ;;  %v458_v3 = vpop.f32.mrb[5].mxu1 }
 0x159   :  { %v732_v4 = vadd.f32 %v450_v1, %v297_v62  ;;  %v452_v5 = vpop.f32.mrb[1].mxu0  ;;  %v459_v6 = vadd.f32 %v458_v3, %v382_v60 }
 0x15a   :  { %v463_v8 = vmax.f32 %v457_v2, 0.0  ;;  %v734_v10 = vadd.f32 %v452_v5, %v299_v0 }
 0x15b   :  { %v461_v11 = vmax.f32 %v732_v4, 0.0  ;;  %v464_v12 = vmax.f32 %v459_v6, 0.0 }
 0x15c   :  { %v462_v13 = vmax.f32 %v734_v10, 0.0  ;;  %v481_v15 = vmul.f32 %v472_v9, %v463_v8 }
 0x15d   :  { %v482_v14 = vmul.f32 %v476_v7, %v464_v12  ;;  %v479_v17 = vmul.f32 %v472_v9, %v461_v11 }
 0x15e   :  { %v480_v16 = vmul.f32 %v476_v7, %v462_v13 }
 0x15f   :  { %v488_v18 = vsel %vm483_vm0, %v482_v14, 0.0 }
 0x160   :  { %v484_v19 = vsel %vm483_vm0, %v480_v16, 0.0  ;;  %v489_v20 = vadd.f32 %v488_v18, %v481_v15 }
 0x161   :  { %v485_v21 = vadd.f32 %v484_v19, %v479_v17 }
 0x163   :  { %486 = vadd.xlane.f32.xlu0 %v485_v21 }
 0x167   :  { %490 = vadd.xlane.f32.xlu0 %v489_v20 }
 0x1f0   :  { %v487_v23 = vpop.xlane.xlu0 %486 }
 0x1f1   :  { %v496_v24 = vadd.f32 %v506_v22, %v487_v23 }
 0x1f3   :  { %499 = vst.msk [vmem:[%s1393_s3] sm:$0xff] %vm498_vm1, %v496_v24 }
 0x1f4   :  { %v491_v25 = vpop.xlane.xlu0 %490 }
 0x1f5   :  { %v497_v26 = vadd.f32 %v506_v22, %v491_v25 }
 0x1f7   :  { %500 = vst.msk [vmem:[%s1393_s3 + $0x8] sm:$0xff] %vm498_vm1, %v497_v26 }

</bundles_post_ra>
